<compile_context>
chip_gen: v7x
topology: tpu7x:2x2x1
jax: 0.10.0
libtpu: 0.0.40
codegen_flags: <defaults>
</compile_context>

<pallas_src>
import jax
import jax.numpy as jnp
from jax.experimental import pallas as pl
from jax.experimental.pallas import tpu as pltpu


_MIN_TILE_BYTES = 512 << 10   # don't split tiles below ~512 KiB per array
_MIN_GRID_BLOCKS = 4          # >= 2 blocks per TensorCore on v7x


def _param_loss_kernel(out_ref, gt_ref, valid_ref, loss_ref):
    # Single pass over the (tile_rows, tile_cols) block; casts are free VPU work.
    d = jnp.abs(out_ref[...] - gt_ref[...].astype(out_ref.dtype))
    # valid is either (tile_rows, 1) -> broadcasts in-register, or full width.
    loss = d * valid_ref[...].astype(out_ref.dtype)
    # Faithful torch semantics: NaN check AFTER the valid multiply so that
    # e.g. inf * 0 -> NaN is also zeroed, exactly like the in-place masking.
    loss_ref[...] = jnp.where(jnp.isnan(loss), jnp.zeros_like(loss), loss)


def _tile_budget_bytes():
    """Per-array tile budget, gated on the TPU generation."""
    try:
        kind = jax.devices()[0].device_kind.lower()
    except Exception:  # pragma: no cover - CPU / interpret fallback
        kind = ""
    if "v7" in kind:
        return 4 << 20   # ~3.2 TB/s HBM: bigger tiles amortize per-step overhead
    if "v5" in kind:
        return 2 << 20   # stay well inside v5e's 16 MiB scoped-VMEM default
    return 3 << 20       # v6e / unknown


def _sublane_multiple(*dtypes):
    """Native sublane tiling: 8 for 4-byte, 16 for 2-byte, 32 for 1-byte."""
    m = 8
    for dt in dtypes:
        isz = jnp.dtype(dt).itemsize
        if isz == 2:
            m = max(m, 16)
        elif isz == 1:
            m = max(m, 32)
    return m


def _choose_tiles(B, P, itemsize, sub, budget):
    """Pick (tile_rows, tile_cols) for a (B, P) array."""
    # Column (lane) tile: block P in multiples of 128 only when it is wide and
    # lane-dense; otherwise take the full extent (always a legal block shape).
    if P > 128 and P % 128 == 0:
        max_cols = ((budget // max(1, sub * itemsize)) // 128) * 128
        tile_cols = int(min(P, max(128, max_cols)))
    else:
        tile_cols = P
    col_blocks = pl.cdiv(P, tile_cols)

    # Row (sublane) tile from the byte budget, rounded to the native sublane.
    rows = budget // max(1, tile_cols * itemsize)
    rows = int(max(sub, (rows // sub) * sub))

    # Split rows until there are enough grid blocks for megacore sharding and
    # DMA/compute pipelining, as long as tiles stay reasonably large.
    if B > sub:
        while (col_blocks * pl.cdiv(B, rows) < _MIN_GRID_BLOCKS
               and rows > sub
               and (rows // 2) * tile_cols * itemsize >= _MIN_TILE_BYTES):
            rows = int(max(sub, ((rows // 2) // sub) * sub))

    if rows >= B:
        rows = B  # full extent along the batch: always a legal block shape
    return rows, tile_cols


def param_loss(param_out, param_gt, valid, *, force_pallas=False,
               min_pallas_elements=1 << 20):
    """Pallas implementation of ParamLoss.forward.

    param_out: (B, P) float array.
    param_gt:  (B, P) array (any float dtype; cast inside the kernel).
    valid:     (B,), (B, 1) or (B, P) mask (any numeric dtype; bool/int8
               recommended for full (B, P) masks to cut HBM traffic).
    """
    if param_out.ndim != 2:
        raise ValueError("param_out must be (batch, num_params)")
    B, P = param_out.shape
    out_dtype = param_out.dtype

    if valid.ndim == 1:
        valid = valid.reshape(B, 1)
    valid_full = valid.shape[1] == P

    # Small tensors (and non-lane-dense P) are better served by fused XLA:
    # a standalone custom call cannot beat it below ~1M elements, and
    # P % 128 != 0 wastes vreg lanes / emits masked partial stores.
    use_pallas = force_pallas or (B * P >= min_pallas_elements and P % 128 == 0)
    if not use_pallas:
        loss = jnp.abs(param_out - param_gt.astype(out_dtype)) * valid.astype(out_dtype)
        return jnp.where(jnp.isnan(loss), jnp.zeros_like(loss), loss)

    out_isz = jnp.dtype(out_dtype).itemsize
    gt_isz = jnp.dtype(param_gt.dtype).itemsize
    valid_isz = jnp.dtype(valid.dtype).itemsize

    sub_dtypes = [out_dtype, param_gt.dtype]
    if valid_full:
        sub_dtypes.append(valid.dtype)
    sub = _sublane_multiple(*sub_dtypes)

    budget = _tile_budget_bytes()
    tile_rows, tile_cols = _choose_tiles(B, P, out_isz, sub, budget)
    grid = (pl.cdiv(B, tile_rows), pl.cdiv(P, tile_cols))

    data_spec = pl.BlockSpec((tile_rows, tile_cols), lambda i, j: (i, j))
    if valid_full:
        valid_spec = pl.BlockSpec((tile_rows, tile_cols), lambda i, j: (i, j))
        valid_tile_bytes = tile_rows * tile_cols * valid_isz
    else:
        valid_spec = pl.BlockSpec((tile_rows, 1), lambda i, j: (i, 0))
        valid_tile_bytes = tile_rows * valid_isz

    # Scoped-VMEM budget: double-buffered (out + gt + valid + loss) tiles
    # plus a few MiB of headroom for Mosaic internal scratch.
    tile_bytes = (tile_rows * tile_cols * (2 * out_isz + gt_isz)) + valid_tile_bytes
    vmem_limit = int(min(max(2 * tile_bytes + (4 << 20), 16 << 20), 48 << 20))

    total_bytes = (B * P * (2 * out_isz + gt_isz)
                   + B * (P if valid_full else 1) * valid_isz)
    cost = pl.CostEstimate(flops=5 * B * P, transcendentals=0,
                           bytes_accessed=total_bytes)

    return pl.pallas_call(
        _param_loss_kernel,
        out_shape=jax.ShapeDtypeStruct((B, P), out_dtype),
        grid=grid,
        in_specs=[data_spec, data_spec, valid_spec],
        out_specs=data_spec,
        compiler_params=pltpu.CompilerParams(
            dimension_semantics=("parallel", "parallel"),
            vmem_limit_bytes=vmem_limit),
        cost_estimate=cost,
    )(param_out, param_gt, valid)


def _reference(param_out, param_gt, valid):
    if valid.ndim == 1:
        valid = valid.reshape(param_out.shape[0], 1)
    loss = jnp.abs(param_out - param_gt.astype(param_out.dtype)) * valid.astype(param_out.dtype)
    return jnp.where(jnp.isnan(loss), jnp.zeros_like(loss), loss)


if __name__ == "__main__":
    key = jax.random.PRNGKey(0)
    k1, k2, k3, k4, k5, k6, k7, k8, k9 = jax.random.split(key, 9)

    # --- Case 1: small shape implied by the module (batch=8, num_params=32),
    #     valid in its native (B, 1) broadcast form, NaN injected in gt.
    B, P = 8, 32
    param_out = jax.random.normal(k1, (B, P), dtype=jnp.float32)
    param_gt = jax.random.normal(k2, (B, P), dtype=jnp.float32)
    valid = (jax.random.uniform(k3, (B, 1)) > 0.3).astype(jnp.float32)
    param_gt = param_gt.at[0, 0].set(jnp.nan)   # exercise the NaN-zeroing path

    loss = param_loss(param_out, param_gt, valid, force_pallas=True)
    jax.block_until_ready(loss)
    ref = _reference(param_out, param_gt, valid)
    assert jnp.allclose(loss, ref, atol=1e-6), "case1 mismatch vs reference"
    assert float(loss[0, 0]) == 0.0, "NaN not zeroed"

    # --- Case 2: lane-dense width, bf16 gt (in-kernel cast, 16-row sublane
    #     alignment), int8 full-width (B, P) mask.
    B2, P2 = 64, 256
    po2 = jax.random.normal(k4, (B2, P2), dtype=jnp.float32)
    pg2 = jax.random.normal(k5, (B2, P2), dtype=jnp.float32).astype(jnp.bfloat16)
    v2 = (jax.random.uniform(k6, (B2, P2)) > 0.5).astype(jnp.int8)

    loss2 = param_loss(po2, pg2, v2, force_pallas=True)
    jax.block_until_ready(loss2)
    ref2 = _reference(po2, pg2, v2)
    assert jnp.allclose(loss2, ref2, atol=1e-5), "case2 mismatch vs reference"

    # --- Case 3: multi-block grid (rows are split for pipelining / megacore),
    #     1-D valid mask reshaped inside the wrapper, partial last row-block.
    B3, P3 = 1024, 512
    po3 = jax.random.normal(k7, (B3, P3), dtype=jnp.float32)
    pg3 = jax.random.normal(k8, (B3, P3), dtype=jnp.float32)
    v3 = (jax.random.uniform(k9, (B3,)) > 0.2).astype(jnp.float32)
    pg3 = pg3.at[17, 3].set(jnp.nan)

    loss3 = param_loss(po3, pg3, v3, force_pallas=True)
    jax.block_until_ready(loss3)
    ref3 = _reference(po3, pg3, v3)
    assert jnp.allclose(loss3, ref3, atol=1e-6), "case3 mismatch vs reference"
    assert float(loss3[17, 3]) == 0.0, "NaN not zeroed (case3)"

    print("KERNEL_OK")
</pallas_src>

<mosaic_0001>
module attributes {stable_mosaic.version = 11 : i64} {
  func.func @_param_loss_kernel(%arg0: i32, %arg1: i32, %arg2: memref<8x32xf32, #tpu.memory_space<vmem>>, %arg3: memref<8x32xf32, #tpu.memory_space<vmem>>, %arg4: memref<8x1xf32, #tpu.memory_space<vmem>>, %arg5: memref<8x32xf32, #tpu.memory_space<vmem>>) attributes {dimension_semantics = [#tpu.dimension_semantics<parallel>, #tpu.dimension_semantics<parallel>], iteration_bounds = array<i64: 1, 1>, scalar_prefetch = 0 : i64, scratch_operands = 0 : i64, tpu.core_type = #tpu.core_type<tc>, window_params = [{transform_indices = @transform_0, window_bounds = array<i64: 8, 32>}, {transform_indices = @transform_1, window_bounds = array<i64: 8, 32>}, {transform_indices = @transform_2, window_bounds = array<i64: 8, 1>}, {transform_indices = @transform_3, window_bounds = array<i64: 8, 32>}]} {
    %c0 = arith.constant 0 : index
    %c0_0 = arith.constant 0 : index
    %0 = vector.load %arg2[%c0, %c0_0] : memref<8x32xf32, #tpu.memory_space<vmem>>, vector<8x32xf32>
    %c0_1 = arith.constant 0 : index
    %c0_2 = arith.constant 0 : index
    %1 = vector.load %arg3[%c0_1, %c0_2] : memref<8x32xf32, #tpu.memory_space<vmem>>, vector<8x32xf32>
    %2 = arith.subf %0, %1 : vector<8x32xf32>
    %3 = math.absf %2 : vector<8x32xf32>
    %c0_3 = arith.constant 0 : index
    %c0_4 = arith.constant 0 : index
    %4 = vector.load %arg4[%c0_3, %c0_4] : memref<8x1xf32, #tpu.memory_space<vmem>>, vector<8x1xf32>
    %5 = vector.broadcast %4 : vector<8x1xf32> to vector<8x32xf32>
    %6 = arith.mulf %3, %5 : vector<8x32xf32>
    %7 = arith.cmpf one, %6, %6 : vector<8x32xf32>
    %cst = arith.constant 0.000000e+00 : f32
    %8 = vector.broadcast %cst : f32 to vector<8x32xf32>
    %9 = arith.select %7, %8, %6 : vector<8x32xi1>, vector<8x32xf32>
    %c0_5 = arith.constant 0 : index
    %c0_6 = arith.constant 0 : index
    %10 = vector.load %arg5[%c0_5, %c0_6] : memref<8x32xf32, #tpu.memory_space<vmem>>, vector<8x32xf32>
    tpu.vector_store %arg5[%c0_5, %c0_6], %9 {strides = array<i32>} : memref<8x32xf32, #tpu.memory_space<vmem>>, vector<8x32xf32>,
    return
  }
  func.func @transform_0(%arg0: i32, %arg1: i32) -> (i32, i32) {
    %c0_i32 = arith.constant 0 : i32
    return %arg0, %arg1 : i32, i32
  }
  func.func @transform_1(%arg0: i32, %arg1: i32) -> (i32, i32) {
    %c0_i32 = arith.constant 0 : i32
    return %arg0, %arg1 : i32, i32
  }
  func.func @transform_2(%arg0: i32, %arg1: i32) -> (i32, i32) {
    %c0_i32 = arith.constant 0 : i32
    %c0_i32_0 = arith.constant 0 : i32
    return %arg0, %c0_i32 : i32, i32
  }
  func.func @transform_3(%arg0: i32, %arg1: i32) -> (i32, i32) {
    %c0_i32 = arith.constant 0 : i32
    return %arg0, %arg1 : i32, i32
  }
}

</mosaic_0001>

<bundles_post_ra>
// kernel: tpu_custom_call.1
= control target key start
LH: loop header
LB: loop body
LE: loop exit
PB: predicated region body
PF: predicated region fallthrough
CT: control target
= control target key end

     0   :  { %8 = vsyncpa [#allocation3], 0  ;;  %s162_s0 = inlined_call_operand.vmem [shape: f32[8,32], index: 0, kind: input, shape index: {}]   ;;  %s163_s1 = inlined_call_operand.hbm [shape: f32[8,32], index: 1, kind: input, shape index: {}]   ;;  %s164_s2 = inlined_call_operand.vmem [shape: f32[8,1], index: 2, kind: input, shape index: {}]   ;;  %s165_s3 = inlined_call_operand.hbm [shape: f32[8,32], index: 3, kind: output, shape index: {}]  }
   0x1   :  { %9 = vsyncpa [#allocation4], 0  ;;  %s109_s12 = smov [#allocation2]   ;;  %s61_s16 = scalar_lea.hbm %s163_s1, 128 }
   0x2   :  { %s18_s13 = sshll.u32 %s109_s12, 4  ;;  %p62_p0 = scmp.ne.s32.totalorder %s163_s1, %s61_s16  ;;  %s19_s13 = int_to_ptr.vmem [resolvable:$true] %s18_s13 }
   0x3   :  { %p65_p1 = scmp.lt.u32.totalorder %s61_s16, %s163_s1 }
   0x5   :  { %p67_p2 = pnand %p65_p1, %p62_p0 }
   0x7   :  { %70 = shalt.err (!%p67_p2)
}
   0x8   :  { %s71_s21 = scalar_lea.vmem %s19_s13, 128  ;;  %p76_p4 = scmp.lt.s32.totalorder %s19_s13, %s19_s13 }
   0x9   :  { %p72_p3 = scmp.ne.s32.totalorder %s19_s13, %s71_s21  ;;  %p77_p5 = scmp.lt.s32.totalorder %s71_s21, %s71_s21 }
   0xb   :  { %p78_p6 = por %p77_p5, %p76_p4 }
   0xd   :  { %p79_p7 = pnand %p78_p6, %p72_p3 }
   0xf   :  { %82 = shalt.err (!%p79_p7)
}
  0x10   :  { %21 = dma.hbm_to_vmem [thread:$0]  %s163_s1, 128, %s19_s13, [#allocation3]  }
  0x11   :  { %105 = dma.done.wait [#allocation3], 128  }
  0x12   :  { %106 = vsyncadd [#allocation3], 4294967168  ;;  %v110_v0 = vmov 0   ;;  %v31_v1 = vld [vmem:[%s164_s2] sm:$0xff]  ;;  %s111_s28 = smov [#allocation5]   ;;  %vm40_vm0 = vcmask 261120  }
  0x13   :  { %60 = vset.pattern.permute.xlu0 %v110_v0  ;;  %v27_v2 = vld [vmem:[%s162_s0] sm:$0xff]  ;;  %s48_s29 = sshll.u32 %s111_s28, 4  ;;  %s49_s29 = int_to_ptr.vmem [resolvable:$true] %s48_s29 }
  0x14   :  { %34 = vperm.xlu0 %60, %v31_v1   ;;  %v28_v3 = vld [vmem:[#allocation2] sm:$0xff]  ;;  %s83_s1 = scalar_lea.vmem %s49_s29, 128  ;;  %p88_p9 = scmp.lt.s32.totalorder %s49_s29, %s49_s29 }
  0x15   :  { %v29_v4 = vsub.f32 %v27_v2, %v28_v3  ;;  %p84_p8 = scmp.ne.s32.totalorder %s49_s29, %s83_s1  ;;  %p89_p10 = scmp.lt.s32.totalorder %s83_s1, %s83_s1 }
  0x17   :  { %v30_v5 = vand.u32 2147483647, %v29_v4  ;;  %p90_p11 = por %p89_p10, %p88_p9 }
  0x19   :  { %p91_p12 = pnand %p90_p11, %p84_p8 }
  0x93   :  { %v35_v6 = vpop.permute.xlu0 %34 }
  0x94   :  { %v37_v7 = vmul.f32 %v35_v6, %v30_v5 }
  0x96   :  { %vm38_vm1 = vcmp.ne.f32.partialorder %v37_v7, %v37_v7 }
  0x97   :  { %v39_v8 = vsel %vm38_vm1, 0.0, %v37_v7 }
  0x98   :  { %41 = vst.msk [vmem:[#allocation5] sm:$0xff] %vm40_vm0, %v39_v8 }
  0x99   :  { %94 = shalt.err (!%p91_p12)
}
  0x9a   :  { %s95_s30 = scalar_lea.hbm %s165_s3, 128 }
  0x9b   :  { %p96_p13 = scmp.ne.s32.totalorder %s165_s3, %s95_s30  ;;  %p99_p0 = scmp.lt.u32.totalorder %s95_s30, %s165_s3 }
  0x9d   :  { %p101_p1 = pnand %p99_p0, %p96_p13 }
  0x9f   :  { %104 = shalt.err (!%p101_p1)
}
  0xa0   :  { %51 = dma.vmem_to_hbm [thread:$0]  %s49_s29, 128, %s165_s3, [#allocation4]  }
  0xa1   :  { %107 = dma.done.wait [#allocation4], 128  }
  0xa2   :  { %108 = vsyncadd [#allocation4], 4294967168 }
  0xa3   :  { %55 = vsyncpa [#allocation3], 1 }
  0xa4   :  { %56 = vsyncpa [#allocation4], 1 }

</bundles_post_ra>
